<compile_context>
chip_gen: v6e
topology: v6e:2x2x1
jax: 0.10.0
libtpu: 0.0.40
codegen_flags: <defaults>
</compile_context>

<pallas_src>
import functools

import jax
import jax.numpy as jnp
import numpy as np
from jax.experimental import pallas as pl
from jax.experimental.pallas import tpu as pltpu

_LANE = 128
_SUBLANE = 8
_VMEM_INPUT_BUDGET = 12 * 1024 * 1024   # double-buffered input working set
_VMEM_LIMIT_BYTES = 32 * 1024 * 1024    # explicit scoped-VMEM limit (safe v5e/v6e/v7x)
_NUM_SHARDS = 2                         # outer parallel axis (2 TCs on v7x)


def _round_up(x, m):
    return (x + m - 1) // m * m


# --------------------------------------------------------------------------
# Kernel: windowed path (window_size > 1).  Processes `planes_per_block`
# (HL, WL) planes per grid step; accumulates (8,128) partial sums/counts into
# per-shard output blocks that stay resident across the "arbitrary" axis.
# --------------------------------------------------------------------------
def _l1_window_plane_kernel(inp_ref, ptgt_ref, sum_ref, cnt_ref, *,
                            n_planes, planes_per_block, steps_per_shard,
                            H, W, HL, WL, pad, ws,
                            brelative_mask, error_threshold, need_valid):
    s = pl.program_id(0)
    i = pl.program_id(1)

    @pl.when(i == 0)
    def _init():
        sum_ref[...] = jnp.zeros_like(sum_ref)
        cnt_ref[...] = jnp.zeros_like(cnt_ref)

    need_edge = (H != HL) or (W != WL)
    if need_edge:   # hoisted out of the per-plane loop (built once)
        row = jax.lax.broadcasted_iota(jnp.int32, (HL, WL), 0)
        col = jax.lax.broadcasted_iota(jnp.int32, (HL, WL), 1)
        edge = jnp.logical_and(row < H, col < W).astype(jnp.float32)

    base = (s * steps_per_shard + i) * planes_per_block

    local_s = jnp.zeros((8, 128), jnp.float32)
    local_c = jnp.zeros((8, 128), jnp.float32)

    for p in range(planes_per_block):
        x = inp_ref[p].astype(jnp.float32)                       # (HL, WL)

        # Windowed min |x - padded_target[h+dy, w+dx]|.  Lane (dx) shifts are
        # hoisted: one lane-shifted slab per dx, ws cheap sublane slices each.
        min_l1 = None
        t = None
        for dx in range(ws):
            slab = ptgt_ref[p, :, dx:dx + WL].astype(jnp.float32)  # (HpL, WL)
            if dx == pad:
                t = slab[pad:pad + HL, :]     # un-padded target aligned to x
            for dy in range(ws):
                d = jnp.abs(x - slab[dy:dy + HL, :])
                min_l1 = d if min_l1 is None else jnp.minimum(min_l1, d)

        if brelative_mask:
            # Divide-free rewrite of  max(d/(t+1e-3), d/(x+1e-3)) < 0.25
            # (valid for positive depth maps: t, x > -1e-3).
            thr = 0.25 * (jnp.minimum(t, x) + 0.001)
            mf = jnp.logical_and(min_l1 < thr,
                                 min_l1 < error_threshold).astype(jnp.float32)
        else:
            mf = jnp.ones_like(min_l1)

        if need_edge:
            mf = mf * edge
        if need_valid:
            mf = mf * ((base + p) < n_planes).astype(jnp.float32)

        contrib = min_l1 * mf

        # (HL, WL) -> (8, 128) partials via aligned tile adds (VPU only); the
        # final cross-lane/sublane reduce happens outside the kernel.
        band_s = jnp.zeros((8, WL), jnp.float32)
        band_c = jnp.zeros((8, WL), jnp.float32)
        for bi in range(HL // 8):
            band_s = band_s + contrib[bi * 8:(bi + 1) * 8, :]
            band_c = band_c + mf[bi * 8:(bi + 1) * 8, :]
        for bj in range(WL // 128):
            local_s = local_s + band_s[:, bj * 128:(bj + 1) * 128]
            local_c = local_c + band_c[:, bj * 128:(bj + 1) * 128]

    sum_ref[0] += local_s
    cnt_ref[0] += local_c


# --------------------------------------------------------------------------
# Kernel: default path (window_size <= 1).  Fully flattened, lane-dense
# (rows_per_block, 128) elementwise blocks.
# --------------------------------------------------------------------------
def _l1_flat_kernel(inp_ref, tgt_ref, sum_ref, cnt_ref, *,
                    n_elems, rows_per_block, steps_per_shard,
                    brelative_mask, error_threshold, need_valid):
    s = pl.program_id(0)
    i = pl.program_id(1)

    @pl.when(i == 0)
    def _init():
        sum_ref[...] = jnp.zeros_like(sum_ref)
        cnt_ref[...] = jnp.zeros_like(cnt_ref)

    x = inp_ref[...].astype(jnp.float32)      # (rows_per_block, 128)
    t = tgt_ref[...].astype(jnp.float32)
    d = jnp.abs(x - t)

    if brelative_mask:
        # Divide-free rewrite (positive depths assumed, see plane kernel).
        thr = 0.25 * (jnp.minimum(t, x) + 0.001)
        mf = jnp.logical_and(d < thr, d < error_threshold).astype(jnp.float32)
    else:
        mf = jnp.ones_like(d)

    if need_valid:
        base = (s * steps_per_shard + i) * (rows_per_block * 128)
        lin = (base
               + jax.lax.broadcasted_iota(jnp.int32, d.shape, 0) * 128
               + jax.lax.broadcasted_iota(jnp.int32, d.shape, 1))
        mf = mf * (lin < n_elems).astype(jnp.float32)

    contrib = d * mf
    local_s = jnp.zeros((8, 128), jnp.float32)
    local_c = jnp.zeros((8, 128), jnp.float32)
    for bi in range(rows_per_block // 8):
        local_s = local_s + contrib[bi * 8:(bi + 1) * 8, :]
        local_c = local_c + mf[bi * 8:(bi + 1) * 8, :]
    sum_ref[0] += local_s
    cnt_ref[0] += local_c


def _accum_call(kernel, in_arrays, in_specs, n_shards, steps):
    sums, cnts = pl.pallas_call(
        kernel,
        out_shape=(jax.ShapeDtypeStruct((n_shards, 8, 128), jnp.float32),
                   jax.ShapeDtypeStruct((n_shards, 8, 128), jnp.float32)),
        grid_spec=pltpu.PrefetchScalarGridSpec(
            num_scalar_prefetch=0,
            grid=(n_shards, steps),
            in_specs=in_specs,
            out_specs=(
                pl.BlockSpec((1, 8, 128), lambda s, i: (s, 0, 0)),
                pl.BlockSpec((1, 8, 128), lambda s, i: (s, 0, 0)),
            )),
        compiler_params=pltpu.CompilerParams(
            dimension_semantics=("parallel", "arbitrary"),
            vmem_limit_bytes=_VMEM_LIMIT_BYTES),
    )(*in_arrays)
    # Masked mean (torch: min_l1_losses[mask_final].mean()); NaN if all masked
    # out, matching torch .mean() of an empty tensor.
    return jnp.sum(sums) / jnp.sum(cnts)


def l1_loss_window(inp, tgt, *, window_size=0, brelative_mask=True,
                   error_threshold=1.0, max_planes_per_block=8,
                   max_rows_per_block=1024):
    """Pallas implementation of L1Loss_window.forward (mask=None path)."""
    # TODO(synk): bilinear align_corners=True interpolation for mismatched
    # spatial shapes is not implemented; inputs must already match the target.
    assert inp.shape == tgt.shape, "input/target spatial shapes must match"
    # TODO(synk): external boolean `mask` argument is not plumbed through
    # (the default mask=None path is implemented).

    B, C, H, W = inp.shape
    n_planes = B * C
    itemsize = max(jnp.dtype(inp.dtype).itemsize, jnp.dtype(tgt.dtype).itemsize)

    if window_size <= 1:
        # ---------- default path: plain |x - t|, flattened & lane dense ----
        n_elems = n_planes * H * W
        rows = -(-n_elems // _LANE)
        tr = _VMEM_INPUT_BUDGET // (2 * 2 * _LANE * itemsize)
        tr = min(tr, max_rows_per_block, _round_up(rows, _SUBLANE))
        tr = max(_SUBLANE, (tr // _SUBLANE) * _SUBLANE)
        num_blocks = -(-rows // tr)
        n_shards = min(_NUM_SHARDS, num_blocks)
        steps = -(-num_blocks // n_shards)
        rows_pad = n_shards * steps * tr
        total_pad = rows_pad * _LANE

        xf = jnp.pad(inp.reshape(-1),
                     [(0, total_pad - n_elems)]).reshape(rows_pad, _LANE)
        tf = jnp.pad(tgt.reshape(-1),
                     [(0, total_pad - n_elems)]).reshape(rows_pad, _LANE)

        kernel = functools.partial(
            _l1_flat_kernel, n_elems=n_elems, rows_per_block=tr,
            steps_per_shard=steps, brelative_mask=brelative_mask,
            error_threshold=error_threshold,
            need_valid=(total_pad != n_elems))
        in_specs = [
            pl.BlockSpec((tr, _LANE), lambda s, i: (s * steps + i, 0)),
            pl.BlockSpec((tr, _LANE), lambda s, i: (s * steps + i, 0)),
        ]
        return _accum_call(kernel, (xf, tf), in_specs, n_shards, steps)

    # -------------------------- windowed path ---------------------------
    ws = int(window_size)
    pad = ws // 2
    HL = _round_up(H, _SUBLANE)
    WL = _round_up(W, _LANE)
    HpL = _round_up(HL + 2 * pad, _SUBLANE)
    WLp = _round_up(WL + 2 * pad, _LANE)

    plane_pair_bytes = (HL * WL + HpL * WLp) * itemsize
    P = _VMEM_INPUT_BUDGET // (2 * plane_pair_bytes)
    P = max(1, min(P, max_planes_per_block, n_planes))
    num_blocks = -(-n_planes // P)
    n_shards = min(_NUM_SHARDS, num_blocks)
    steps = -(-num_blocks // n_shards)
    n_planes_pad = n_shards * steps * P

    inp3 = inp.reshape(n_planes, H, W)
    tgt3 = tgt.reshape(n_planes, H, W)
    # Only ONE target tensor is DMA'd; the window zero-pad and the
    # lane/sublane padding are fused into a single wrapper-side pad.
    # TODO(synk): this pad still costs one extra HBM write+read of the
    # target; a fully in-kernel boundary mask would remove it.
    inp_p = jnp.pad(inp3, ((0, n_planes_pad - n_planes),
                           (0, HL - H), (0, WL - W)))
    tgt_p = jnp.pad(tgt3, ((0, n_planes_pad - n_planes),
                           (pad, HpL - H - pad), (pad, WLp - W - pad)))

    kernel = functools.partial(
        _l1_window_plane_kernel, n_planes=n_planes, planes_per_block=P,
        steps_per_shard=steps, H=H, W=W, HL=HL, WL=WL, pad=pad, ws=ws,
        brelative_mask=brelative_mask, error_threshold=error_threshold,
        need_valid=(n_planes_pad != n_planes))
    in_specs = [
        pl.BlockSpec((P, HL, WL), lambda s, i: (s * steps + i, 0, 0)),
        pl.BlockSpec((P, HpL, WLp), lambda s, i: (s * steps + i, 0, 0)),
    ]
    return _accum_call(kernel, (inp_p, tgt_p), in_specs, n_shards, steps)


def _reference_loss(inp, tgt, window_size, brelative_mask=True,
                    error_threshold=1.0):
    """Pure-JAX reference mirroring the PyTorch forward (mask=None path)."""
    B, C, H, W = inp.shape
    if window_size > 1:
        pad = window_size // 2
        pt = jnp.pad(tgt, ((0, 0), (0, 0), (pad, pad), (pad, pad)))
        windows = [pt[:, :, dy:dy + H, dx:dx + W]
                   for dy in range(window_size) for dx in range(window_size)]
        min_l1 = jnp.min(jnp.abs(inp[..., None] - jnp.stack(windows, -1)), -1)
    else:
        min_l1 = jnp.abs(inp - tgt)
    if brelative_mask:
        rel = jnp.maximum(min_l1 / (tgt + 0.001), min_l1 / (inp + 0.001))
        m = jnp.logical_and(rel < 0.25, min_l1 < error_threshold)
    else:
        m = jnp.ones_like(min_l1, dtype=bool)
    return jnp.sum(jnp.where(m, min_l1, 0.0)) / jnp.sum(m.astype(jnp.float32))


if __name__ == "__main__":
    key = jax.random.PRNGKey(0)

    def make_inputs(shape, k):
        k1, k2 = jax.random.split(k)
        # Positive depth-like values.
        i = jax.random.uniform(k1, shape, jnp.float32, 0.5, 10.0)
        t = jnp.abs(i + 0.1 * jax.random.normal(k2, shape, jnp.float32)) + 0.1
        return i, t

    for shape in [(2, 1, 16, 16), (2, 3, 10, 20)]:
        key, sub = jax.random.split(key)
        inp, tgt = make_inputs(shape, sub)
        for ws in (0, 3):
            for small_blocks in (False, True):
                loss = l1_loss_window(
                    inp, tgt, window_size=ws,
                    max_planes_per_block=(2 if small_blocks else 8),
                    max_rows_per_block=(8 if small_blocks else 1024))
                loss = jax.block_until_ready(loss)
                ref = jax.block_until_ready(_reference_loss(inp, tgt, ws))
                np.testing.assert_allclose(np.asarray(loss), np.asarray(ref),
                                           rtol=2e-5, atol=1e-6)
        # brelative_mask=False -> plain mean over all elements.
        loss = l1_loss_window(inp, tgt, window_size=3, brelative_mask=False)
        loss = jax.block_until_ready(loss)
        ref = jax.block_until_ready(
            _reference_loss(inp, tgt, 3, brelative_mask=False))
        np.testing.assert_allclose(np.asarray(loss), np.asarray(ref),
                                   rtol=2e-5, atol=1e-6)

    print("KERNEL_OK")
</pallas_src>

<mosaic_0001>
module attributes {stable_mosaic.version = 11 : i64} {
  func.func @_l1_flat_kernel(%arg0: i32, %arg1: i32, %arg2: memref<8x128xf32, #tpu.memory_space<vmem>>, %arg3: memref<8x128xf32, #tpu.memory_space<vmem>>, %arg4: memref<1x8x128xf32, #tpu.memory_space<vmem>>, %arg5: memref<1x8x128xf32, #tpu.memory_space<vmem>>) attributes {dimension_semantics = [#tpu.dimension_semantics<parallel>, #tpu.dimension_semantics<arbitrary>], iteration_bounds = array<i64: 1, 1>, scalar_prefetch = 0 : i64, scratch_operands = 0 : i64, tpu.core_type = #tpu.core_type<tc>, window_params = [{transform_indices = @transform_0, window_bounds = array<i64: 8, 128>}, {transform_indices = @transform_1, window_bounds = array<i64: 8, 128>}, {transform_indices = @transform_2, window_bounds = array<i64: 1, 8, 128>}, {transform_indices = @transform_3, window_bounds = array<i64: 1, 8, 128>}]} {
    %c0_i32 = arith.constant 0 : i32
    %0 = arith.cmpi eq, %arg1, %c0_i32 : i32
    %1 = arith.extui %0 : i1 to i32
    %c0_i32_0 = arith.constant 0 : i32
    %2 = arith.cmpi ne, %1, %c0_i32_0 : i32
    scf.if %2 {
      %cst_20 = arith.constant 0.000000e+00 : f32
      %50 = vector.broadcast %cst_20 : f32 to vector<1x8x128xf32>
      %c0_21 = arith.constant 0 : index
      %c0_22 = arith.constant 0 : index
      %c0_23 = arith.constant 0 : index
      %51 = vector.load %arg4[%c0_21, %c0_22, %c0_23] : memref<1x8x128xf32, #tpu.memory_space<vmem>>, vector<1x8x128xf32>
      tpu.vector_store %arg4[%c0_21, %c0_22, %c0_23], %50 {strides = array<i32>} : memref<1x8x128xf32, #tpu.memory_space<vmem>>, vector<1x8x128xf32>,
      %cst_24 = arith.constant 0.000000e+00 : f32
      %52 = vector.broadcast %cst_24 : f32 to vector<1x8x128xf32>
      %c0_25 = arith.constant 0 : index
      %c0_26 = arith.constant 0 : index
      %c0_27 = arith.constant 0 : index
      %53 = vector.load %arg5[%c0_25, %c0_26, %c0_27] : memref<1x8x128xf32, #tpu.memory_space<vmem>>, vector<1x8x128xf32>
      tpu.vector_store %arg5[%c0_25, %c0_26, %c0_27], %52 {strides = array<i32>} : memref<1x8x128xf32, #tpu.memory_space<vmem>>, vector<1x8x128xf32>,
    } else {
    }
    %c0 = arith.constant 0 : index
    %c0_1 = arith.constant 0 : index
    %3 = vector.load %arg2[%c0, %c0_1] : memref<8x128xf32, #tpu.memory_space<vmem>>, vector<8x128xf32>
    %c0_2 = arith.constant 0 : index
    %c0_3 = arith.constant 0 : index
    %4 = vector.load %arg3[%c0_2, %c0_3] : memref<8x128xf32, #tpu.memory_space<vmem>>, vector<8x128xf32>
    %5 = arith.subf %3, %4 : vector<8x128xf32>
    %6 = math.absf %5 : vector<8x128xf32>
    %7 = arith.minimumf %4, %3 : vector<8x128xf32>
    %cst = arith.constant 1.000000e-03 : f32
    %8 = vector.broadcast %cst : f32 to vector<8x128xf32>
    %9 = arith.addf %7, %8 : vector<8x128xf32>
    %cst_4 = arith.constant 2.500000e-01 : f32
    %10 = vector.broadcast %cst_4 : f32 to vector<8x128xf32>
    %11 = arith.mulf %10, %9 : vector<8x128xf32>
    %12 = arith.cmpf olt, %6, %11 : vector<8x128xf32>
    %cst_5 = arith.constant 1.000000e+00 : f32
    %13 = vector.broadcast %cst_5 : f32 to vector<8x128xf32>
    %14 = arith.cmpf olt, %6, %13 : vector<8x128xf32>
    %15 = arith.andi %12, %14 : vector<8x128xi1>
    %16 = arith.extui %15 : vector<8x128xi1> to vector<8x128xi32>
    %17 = arith.sitofp %16 : vector<8x128xi32> to vector<8x128xf32>
    %c1_i32 = arith.constant 1 : i32
    %18 = arith.muli %arg0, %c1_i32 : i32
    %19 = arith.addi %18, %arg1 : i32
    %c1024_i32 = arith.constant 1024 : i32
    %20 = arith.muli %19, %c1024_i32 : i32
    %21 = tpu.iota {dimensions = array<i32: 0>} : vector<8x128xi32>
    %c128_i32 = arith.constant 128 : i32
    %22 = vector.broadcast %c128_i32 : i32 to vector<8x128xi32>
    %23 = arith.muli %21, %22 : vector<8x128xi32>
    %24 = vector.broadcast %20 : i32 to vector<8x128xi32>
    %25 = arith.addi %24, %23 : vector<8x128xi32>
    %26 = tpu.iota {dimensions = array<i32: 1>} : vector<8x128xi32>
    %27 = arith.addi %25, %26 : vector<8x128xi32>
    %c512_i32 = arith.constant 512 : i32
    %28 = vector.broadcast %c512_i32 : i32 to vector<8x128xi32>
    %29 = arith.cmpi slt, %27, %28 : vector<8x128xi32>
    %30 = arith.extui %29 : vector<8x128xi1> to vector<8x128xi32>
    %31 = arith.sitofp %30 : vector<8x128xi32> to vector<8x128xf32>
    %32 = arith.mulf %17, %31 : vector<8x128xf32>
    %33 = arith.mulf %6, %32 : vector<8x128xf32>
    %cst_6 = arith.constant 0.000000e+00 : f32
    %34 = vector.broadcast %cst_6 : f32 to vector<8x128xf32>
    %cst_7 = arith.constant 0.000000e+00 : f32
    %35 = vector.broadcast %cst_7 : f32 to vector<8x128xf32>
    %36 = arith.addf %34, %33 : vector<8x128xf32>
    %37 = arith.addf %35, %32 : vector<8x128xf32>
    %c0_8 = arith.constant 0 : index
    %c0_9 = arith.constant 0 : index
    %c0_10 = arith.constant 0 : index
    %38 = vector.load %arg4[%c0_8, %c0_9, %c0_10] : memref<1x8x128xf32, #tpu.memory_space<vmem>>, vector<1x8x128xf32>
    %39 = vector.shape_cast %38 : vector<1x8x128xf32> to vector<8x128xf32>
    %40 = arith.addf %39, %36 : vector<8x128xf32>
    %c0_11 = arith.constant 0 : index
    %c0_12 = arith.constant 0 : index
    %c0_13 = arith.constant 0 : index
    %41 = vector.load %arg4[%c0_11, %c0_12, %c0_13] : memref<1x8x128xf32, #tpu.memory_space<vmem>>, vector<1x8x128xf32>
    %42 = vector.shape_cast %41 : vector<1x8x128xf32> to vector<8x128xf32>
    %43 = vector.shape_cast %40 : vector<8x128xf32> to vector<1x8x128xf32>
    tpu.vector_store %arg4[%c0_11, %c0_12, %c0_13], %43 {strides = array<i32>} : memref<1x8x128xf32, #tpu.memory_space<vmem>>, vector<1x8x128xf32>,
    %c0_14 = arith.constant 0 : index
    %c0_15 = arith.constant 0 : index
    %c0_16 = arith.constant 0 : index
    %44 = vector.load %arg5[%c0_14, %c0_15, %c0_16] : memref<1x8x128xf32, #tpu.memory_space<vmem>>, vector<1x8x128xf32>
    %45 = vector.shape_cast %44 : vector<1x8x128xf32> to vector<8x128xf32>
    %46 = arith.addf %45, %37 : vector<8x128xf32>
    %c0_17 = arith.constant 0 : index
    %c0_18 = arith.constant 0 : index
    %c0_19 = arith.constant 0 : index
    %47 = vector.load %arg5[%c0_17, %c0_18, %c0_19] : memref<1x8x128xf32, #tpu.memory_space<vmem>>, vector<1x8x128xf32>
    %48 = vector.shape_cast %47 : vector<1x8x128xf32> to vector<8x128xf32>
    %49 = vector.shape_cast %46 : vector<8x128xf32> to vector<1x8x128xf32>
    tpu.vector_store %arg5[%c0_17, %c0_18, %c0_19], %49 {strides = array<i32>} : memref<1x8x128xf32, #tpu.memory_space<vmem>>, vector<1x8x128xf32>,
    return
  }
  func.func @transform_0(%arg0: i32, %arg1: i32) -> (i32, i32) {
    %c1_i32 = arith.constant 1 : i32
    %0 = arith.muli %arg0, %c1_i32 : i32
    %1 = arith.addi %0, %arg1 : i32
    %c0_i32 = arith.constant 0 : i32
    %c0_i32_0 = arith.constant 0 : i32
    return %1, %c0_i32 : i32, i32
  }
  func.func @transform_1(%arg0: i32, %arg1: i32) -> (i32, i32) {
    %c1_i32 = arith.constant 1 : i32
    %0 = arith.muli %arg0, %c1_i32 : i32
    %1 = arith.addi %0, %arg1 : i32
    %c0_i32 = arith.constant 0 : i32
    %c0_i32_0 = arith.constant 0 : i32
    return %1, %c0_i32 : i32, i32
  }
  func.func @transform_2(%arg0: i32, %arg1: i32) -> (i32, i32, i32) {
    %c0_i32 = arith.constant 0 : i32
    %c0_i32_0 = arith.constant 0 : i32
    %c0_i32_1 = arith.constant 0 : i32
    return %arg0, %c0_i32, %c0_i32_0 : i32, i32, i32
  }
  func.func @transform_3(%arg0: i32, %arg1: i32) -> (i32, i32, i32) {
    %c0_i32 = arith.constant 0 : i32
    %c0_i32_0 = arith.constant 0 : i32
    %c0_i32_1 = arith.constant 0 : i32
    return %arg0, %c0_i32, %c0_i32_0 : i32, i32, i32
  }
}

</mosaic_0001>

<bundles_post_ra>
// kernel: tpu_custom_call.1
= control target key start
LH: loop header
LB: loop body
LE: loop exit
PB: predicated region body
PF: predicated region fallthrough
CT: control target
= control target key end

     0   :  { %9 = vsyncpa [#allocation3], 0  ;;  %s250_s0 = inlined_call_operand.hbm [shape: f32[8,128], index: 0, kind: input, shape index: {}]   ;;  %s251_s1 = inlined_call_operand.hbm [shape: f32[8,128], index: 1, kind: input, shape index: {}]   ;;  %s252_s2 = inlined_call_operand.hbm [shape: f32[1,8,128], index: 2, kind: output, shape index: {0}]   ;;  %s253_s3 = inlined_call_operand.hbm [shape: f32[1,8,128], index: 3, kind: output, shape index: {1}]  }
   0x1   :  { %10 = vsyncpa [#allocation6], 0 }
   0x2   :  { %11 = vsyncpa [#allocation4], 0 }
   0x3   :  { %12 = vsyncpa [#allocation9], 0  ;;  %s213_s12 = smov [#allocation2]   ;;  %s214_s14 = smov [#allocation5]  }
   0x4   :  { %s22_s13 = sshll.u32 %s213_s12, 4  ;;  %s35_s15 = sshll.u32 %s214_s14, 4  ;;  %s23_s13 = int_to_ptr.vmem [resolvable:$true] %s22_s13  ;;  %s36_s15 = int_to_ptr.vmem [resolvable:$true] %s35_s15 }
   0x5   :  { %s133_s16 = scalar_lea.vmem %s23_s13, 128  ;;  %p138_p1 = scmp.lt.s32.totalorder %s23_s13, %s23_s13 }
   0x6   :  { %p134_p0 = scmp.ne.s32.totalorder %s23_s13, %s133_s16  ;;  %p139_p2 = scmp.lt.s32.totalorder %s133_s16, %s133_s16 }
   0x8   :  { %p140_p3 = por %p139_p2, %p138_p1 }
   0xa   :  { %p141_p4 = pnand %p140_p3, %p134_p0 }
   0xc   :  { %144 = shalt.err (!%p141_p4)
}
   0xd   :  { %25 = dma.hbm_to_vmem [thread:$0]  %s250_s0, 128, %s23_s13, [#allocation3]  }
   0xe   :  { %s153_s19 = scalar_lea.vmem %s36_s15, 128  ;;  %p158_p6 = scmp.lt.s32.totalorder %s36_s15, %s36_s15 }
   0xf   :  { %p154_p5 = scmp.ne.s32.totalorder %s36_s15, %s153_s19  ;;  %p159_p7 = scmp.lt.s32.totalorder %s153_s19, %s153_s19 }
  0x11   :  { %p160_p8 = por %p159_p7, %p158_p6 }
  0x13   :  { %p161_p9 = pnand %p160_p8, %p154_p5 }
  0x15   :  { %164 = shalt.err (!%p161_p9)
}
  0x16   :  { %38 = dma.hbm_to_vmem [thread:$0]  %s251_s1, 128, %s36_s15, [#allocation6]  }
  0x17   :  { %205 = dma.done.wait [#allocation3], 128  }
  0x18   :  { %206 = vsyncadd [#allocation3], 4294967168 }
  0x19   :  { %207 = dma.done.wait [#allocation6], 128  }
  0x1a   :  { %208 = vsyncadd [#allocation6], 4294967168  ;;  %v67_v0 = vlaneseq  ;;  %v53_v4 = vld [vmem:[#allocation2] sm:$0xff]  ;;  %v54_v5 = vld [vmem:[#allocation5] sm:$0xff]  ;;  %v215_v12 = vmov 0.0   ;;  %s216_s0 = smov [#allocation8]  }
  0x1b   :  { %v55_v7 = vsub.f32 %v53_v4, %v54_v5  ;;  %v57_v8 = vmin.f32 %v54_v5, %v53_v4  ;;  %s104_s1 = sshll.u32 %s216_s0, 4  ;;  %s217_s22 = smov [#allocation7]   ;;  %s105_s1 = int_to_ptr.vmem [resolvable:$true] %s104_s1 }
  0x1c   :  { %v68_v1 = vshrl.u32 %v67_v0, 7  ;;  %v73_v2 = vand.u32 127, %v67_v0  ;;  %s94_s23 = sshll.u32 %s217_s22, 4  ;;  %s165_s24 = scalar_lea.vmem %s105_s1, 128  ;;  %s95_s23 = int_to_ptr.vmem [resolvable:$true] %s94_s23 }
  0x1d   :  { %v56_v9 = vand.u32 2147483647, %v55_v7  ;;  %v58_v10 = vadd.f32 0.001, %v57_v8  ;;  %p166_p10 = scmp.ne.s32.totalorder %s105_s1, %s165_s24  ;;  %p170_p11 = scmp.lt.s32.totalorder %s105_s1, %s105_s1 }
  0x1e   :  { %v69_v3 = vmul.u32 128, %v68_v1  ;;  %p171_p12 = scmp.lt.s32.totalorder %s165_s24, %s165_s24 }
  0x1f   :  { %v59_v11 = vmul.f32 0.25, %v58_v10  ;;  %vm61_vm1 = vcmp.lt.f32.partialorder %v56_v9, 1.0 }
  0x20   :  { %v74_v6 = vadd.s32 %v73_v2, %v69_v3  ;;  %p172_p13 = por %p171_p12, %p170_p11 }
  0x21   :  { %vm60_vm2 = vcmp.lt.f32.partialorder %v56_v9, %v59_v11 }
  0x22   :  { %vm75_vm0 = vcmp.lt.s32.totalorder %v74_v6, 512  ;;  %vm62_vm3 = vmand %vm60_vm2, %vm61_vm1  ;;  %p173_p0 = pnand %p172_p13, %p166_p10 }
  0x23   :  { %v119_v13 = vsel %vm75_vm0, 1.0, %v215_v12  ;;  %v118_v14 = vsel %vm62_vm3, 1.0, %v215_v12 }
  0x24   :  { %v78_v15 = vmul.f32 %v119_v13, %v118_v14 }
  0x26   :  { %v79_v16 = vmul.f32 %v78_v15, %v56_v9  ;;  %87 = vst [vmem:[#allocation8] sm:$0xff] %v78_v15 }
  0x27   :  { %176 = shalt.err (!%p173_p0)
}
  0x28   :  { %107 = dma.vmem_to_hbm [thread:$0]  %s105_s1, 128, %s253_s3, [#allocation9]   ;;  %84 = vst [vmem:[#allocation7] sm:$0xff] %v79_v16 }
  0x29   :  { %s185_s27 = scalar_lea.vmem %s95_s23, 128  ;;  %p190_p2 = scmp.lt.s32.totalorder %s95_s23, %s95_s23 }
  0x2a   :  { %p186_p1 = scmp.ne.s32.totalorder %s95_s23, %s185_s27  ;;  %p191_p3 = scmp.lt.s32.totalorder %s185_s27, %s185_s27 }
  0x2c   :  { %p192_p4 = por %p191_p3, %p190_p2 }
  0x2e   :  { %p193_p5 = pnand %p192_p4, %p186_p1 }
  0x30   :  { %196 = shalt.err (!%p193_p5)
}
  0x31   :  { %97 = dma.vmem_to_hbm [thread:$0]  %s95_s23, 128, %s252_s2, [#allocation4]  }
  0x32   :  { %209 = dma.done.wait [#allocation4], 128  }
  0x33   :  { %210 = vsyncadd [#allocation4], 4294967168 }
  0x34   :  { %211 = dma.done.wait [#allocation9], 128  }
  0x35   :  { %212 = vsyncadd [#allocation9], 4294967168 }
  0x36   :  { %114 = vsyncpa [#allocation3], 1 }
  0x37   :  { %115 = vsyncpa [#allocation6], 1 }
  0x38   :  { %116 = vsyncpa [#allocation4], 1 }
  0x39   :  { %117 = vsyncpa [#allocation9], 1 }

</bundles_post_ra>
